<compile_context>
chip_gen: v7x
topology: tpu7x:2x2x1
jax: 0.10.0
libtpu: 0.0.40
codegen_flags: <defaults>
</compile_context>

<pallas_src>
import functools

import jax
import jax.numpy as jnp
from jax.experimental import pallas as pl
from jax.experimental.pallas import tpu as pltpu

_MiB = 1024 * 1024
_LANES = 128


def _vmem_capacity_bytes():
    try:
        return int(pltpu.get_tpu_info().vmem_capacity_bytes)
    except Exception:
        return 64 * _MiB  # conservative fallback (v7x per-TensorCore VMEM)


# ---------------------------------------------------------------------------
# Kernels
# ---------------------------------------------------------------------------

def _ln_resident_kernel(x_ref, w_ref, b_ref, o_ref, *, inv_n, eps, pad_count):
    """One grid step == one sample; whole (R, L) slab resident in VMEM."""
    x = x_ref[...].astype(jnp.float32)                      # (R, L)
    mean = jnp.sum(x) * inv_n
    xc = x - mean
    # Centered sum of squares; padded lanes hold x == 0 so they contribute
    # exactly pad_count * mean^2 — subtract it off.
    css = jnp.sum(xc * xc) - pad_count * (mean * mean)
    var = jnp.maximum(css * inv_n, 0.0)
    inv = jax.lax.rsqrt(var + eps)
    w = w_ref[...].astype(jnp.float32)                      # (R, 1) per-row scale
    b = b_ref[...].astype(jnp.float32)                      # (R, 1) per-row shift
    o_ref[...] = (xc * (inv * w) + b).astype(o_ref.dtype)


def _ln_stats_kernel(x_ref, s1_ref, s2_ref):
    """Tiled pass 1: accumulate per-sample lane-wise sum / sum-of-squares."""
    @pl.when(pl.program_id(1) == 0)
    def _():
        s1_ref[...] = jnp.zeros_like(s1_ref)
        s2_ref[...] = jnp.zeros_like(s2_ref)

    x = x_ref[...].astype(jnp.float32)                      # (tR, L)
    s1_ref[...] += jnp.sum(x, axis=0, keepdims=True)        # (1, L)
    s2_ref[...] += jnp.sum(x * x, axis=0, keepdims=True)


def _ln_norm_kernel(s1_ref, s2_ref, x_ref, w_ref, b_ref, o_ref, *, inv_n, eps):
    """Tiled pass 2: normalize + affine, streaming row tiles."""
    s1 = jnp.sum(s1_ref[...])
    s2 = jnp.sum(s2_ref[...])
    mean = s1 * inv_n
    var = jnp.maximum(s2 * inv_n - mean * mean, 0.0)
    inv = jax.lax.rsqrt(var + eps)
    x = x_ref[...].astype(jnp.float32)                      # (tR, L)
    w = w_ref[...].astype(jnp.float32)                      # (tR, 1)
    b = b_ref[...].astype(jnp.float32)
    o_ref[...] = ((x - mean) * (inv * w) + b).astype(o_ref.dtype)


# ---------------------------------------------------------------------------
# pallas_call wrappers
# ---------------------------------------------------------------------------

def _layer_norm_resident(x_flat, w_col, b_col, eps, inv_n, pad_count, vmem_cap):
    N, R, L = x_flat.shape
    itemsize = x_flat.dtype.itemsize
    slab_in = R * L * itemsize
    slab_f32 = R * L * 4
    # x dbuf + out dbuf + ~3 f32 temporaries, plus headroom; cap well below
    # physical VMEM so Mosaic keeps internal scratch (v7x has only 64 MiB).
    need = 4 * slab_in + 3 * slab_f32 + 1 * _MiB
    vmem_limit = int(min(vmem_cap - 12 * _MiB,
                         max(need + slab_f32 + 8 * _MiB, 32 * _MiB)))
    kernel = functools.partial(_ln_resident_kernel, inv_n=inv_n, eps=eps,
                               pad_count=pad_count)
    return pl.pallas_call(
        kernel,
        out_shape=jax.ShapeDtypeStruct((N, R, L), x_flat.dtype),
        grid_spec=pltpu.PrefetchScalarGridSpec(
            num_scalar_prefetch=0,
            grid=(N,),
            in_specs=[
                pl.BlockSpec((None, R, L), lambda n: (n, 0, 0)),
                pl.BlockSpec((R, 1), lambda n: (0, 0)),   # tiny, constant block
                pl.BlockSpec((R, 1), lambda n: (0, 0)),
            ],
            out_specs=pl.BlockSpec((None, R, L), lambda n: (n, 0, 0)),
        ),
        compiler_params=pltpu.CompilerParams(
            dimension_semantics=("parallel",),
            vmem_limit_bytes=vmem_limit,
        ),
    )(x_flat, w_col, b_col)


def _pick_row_tile(R, L, itemsize, budget_bytes):
    """Largest row tile whose input bytes fit the budget, respecting the
    dtype's native sublane granularity (8 for 4B, 16 for 2B, 32 for 1B)."""
    gran = max(8, 32 // itemsize)
    cands = sorted({R} | {t for t in range(gran, R, gran) if R % t == 0},
                   reverse=True)
    for t in cands:
        if t * L * itemsize <= budget_bytes:
            return t
    return cands[-1]  # smallest valid; caller sizes vmem_limit from actual tR


def _layer_norm_tiled(x_flat, w_col, b_col, eps, inv_n, vmem_cap):
    N, R, L = x_flat.shape
    itemsize = x_flat.dtype.itemsize
    tile_budget = 4 * _MiB if vmem_cap >= 96 * _MiB else int(2.5 * _MiB)
    tR = _pick_row_tile(R, L, itemsize, tile_budget)
    nT = R // tR
    tile_in = tR * L * itemsize
    tile_f32 = tR * L * 4

    def limit(need):
        return int(min(vmem_cap - 12 * _MiB, max(2 * need + 8 * _MiB, 32 * _MiB)))

    # Pass 1: per-sample lane-wise partial sums / sums of squares.
    s1, s2 = pl.pallas_call(
        _ln_stats_kernel,
        out_shape=(jax.ShapeDtypeStruct((N, 1, L), jnp.float32),
                   jax.ShapeDtypeStruct((N, 1, L), jnp.float32)),
        grid_spec=pltpu.PrefetchScalarGridSpec(
            num_scalar_prefetch=0,
            grid=(N, nT),
            in_specs=[pl.BlockSpec((None, tR, L), lambda n, t: (n, t, 0))],
            out_specs=[pl.BlockSpec((None, 1, L), lambda n, t: (n, 0, 0)),
                       pl.BlockSpec((None, 1, L), lambda n, t: (n, 0, 0))],
        ),
        compiler_params=pltpu.CompilerParams(
            dimension_semantics=("parallel", "arbitrary"),
            vmem_limit_bytes=limit(2 * tile_in + 2 * tile_f32 + _MiB)),
    )(x_flat)

    # Pass 2: normalize + affine.  No reduction -> both axes parallel.  The
    # affine operands are compact (tR, 1) columns, so re-fetching them per
    # tile costs ~nothing (vs. the old slab-sized per-tile stream).
    kernel = functools.partial(_ln_norm_kernel, inv_n=inv_n, eps=eps)
    return pl.pallas_call(
        kernel,
        out_shape=jax.ShapeDtypeStruct((N, R, L), x_flat.dtype),
        grid_spec=pltpu.PrefetchScalarGridSpec(
            num_scalar_prefetch=0,
            grid=(N, nT),
            in_specs=[
                pl.BlockSpec((None, 1, L), lambda n, t: (n, 0, 0)),
                pl.BlockSpec((None, 1, L), lambda n, t: (n, 0, 0)),
                pl.BlockSpec((None, tR, L), lambda n, t: (n, t, 0)),
                pl.BlockSpec((tR, 1), lambda n, t: (t, 0)),
                pl.BlockSpec((tR, 1), lambda n, t: (t, 0)),
            ],
            out_specs=pl.BlockSpec((None, tR, L), lambda n, t: (n, t, 0)),
        ),
        compiler_params=pltpu.CompilerParams(
            dimension_semantics=("parallel", "parallel"),
            vmem_limit_bytes=limit(4 * tile_in + 2 * tile_f32 + _MiB)),
    )(s1, s2, x_flat, w_col, b_col)


def layer_norm_drit(x, weight=None, bias=None, eps=1e-5, force_tiled=False):
    """DRIT LayerNorm: x (N,C,H,W), weight/bias (C,1,1) or None. -> (N,C,H,W)."""
    N, C, H, W = x.shape
    HW = H * W
    n_true = C * HW
    inv_n = 1.0 / float(n_true)

    # Lane-dense layout: pad each channel's spatial extent to a multiple of
    # 128 lanes (zero pads don't perturb the statistics with inv_n = 1/true_n),
    # so every row of the (R, 128) slab belongs to one channel and the affine
    # params collapse to a tiny (R, 1) column.
    HWp = ((HW + _LANES - 1) // _LANES) * _LANES
    L = _LANES
    rows_per_c = HWp // L
    R = C * rows_per_c
    pad_count = C * (HWp - HW)

    if HWp == HW:
        x_flat = x.reshape(N, R, L)
    else:
        x_flat = jnp.pad(x.reshape(N, C, HW),
                         ((0, 0), (0, 0), (0, HWp - HW))).reshape(N, R, L)

    if weight is None:
        w_col = jnp.ones((R, 1), jnp.float32)
    else:
        w_col = jnp.repeat(weight.reshape(C, 1), rows_per_c, axis=0)
    if bias is None:
        b_col = jnp.zeros((R, 1), jnp.float32)
    else:
        b_col = jnp.repeat(bias.reshape(C, 1), rows_per_c, axis=0)

    vmem_cap = _vmem_capacity_bytes()
    itemsize = x_flat.dtype.itemsize
    resident_need = 4 * R * L * itemsize + 3 * R * L * 4 + 1 * _MiB
    resident_budget = min(vmem_cap - 16 * _MiB, vmem_cap // 2)

    # TODO(synk): N==1 on v7x could split rows across the two TensorCores; kept
    # on the resident path here to avoid extra HBM traffic on single-TC chips.
    if resident_need <= resident_budget and not force_tiled:
        out_flat = _layer_norm_resident(x_flat, w_col, b_col, eps, inv_n,
                                        pad_count, vmem_cap)
    else:
        out_flat = _layer_norm_tiled(x_flat, w_col, b_col, eps, inv_n, vmem_cap)

    if HWp == HW:
        return out_flat.reshape(N, C, H, W)
    return out_flat.reshape(N, C, HWp)[..., :HW].reshape(N, C, H, W)


# ---------------------------------------------------------------------------
# Pure-JAX reference (mirrors F.layer_norm over dims (1,2,3))
# ---------------------------------------------------------------------------

def _reference(x, weight, bias, eps=1e-5):
    xf = x.astype(jnp.float32)
    mean = jnp.mean(xf, axis=(1, 2, 3), keepdims=True)
    var = jnp.mean((xf - mean) ** 2, axis=(1, 2, 3), keepdims=True)
    y = (xf - mean) / jnp.sqrt(var + eps)
    if weight is not None:
        y = y * weight[None] + bias[None]
    return y.astype(x.dtype)


if __name__ == "__main__":
    key = jax.random.PRNGKey(0)
    N, C, H, W = 2, 4, 16, 16

    kx, kw, kb = jax.random.split(key, 3)
    x = jax.random.normal(kx, (N, C, H, W), dtype=jnp.float32)
    weight = (1.0 + 0.1 * jax.random.normal(kw, (C, 1, 1))).astype(jnp.float32)
    bias = (0.1 * jax.random.normal(kb, (C, 1, 1))).astype(jnp.float32)

    ref = _reference(x, weight, bias)

    # Resident (fast) path.
    out = jax.block_until_ready(layer_norm_drit(x, weight, bias))
    assert out.shape == (N, C, H, W)
    assert jnp.allclose(out, ref, atol=1e-5, rtol=1e-5), "resident path mismatch"

    # Exercise the tiled (large-slab) fallback path at the small shape.
    out_tiled = jax.block_until_ready(
        layer_norm_drit(x, weight, bias, force_tiled=True))
    assert jnp.allclose(out_tiled, ref, atol=1e-5, rtol=1e-5), "tiled path mismatch"

    # Exercise the lane-padded layout (HW not a multiple of 128).
    x2 = jax.random.normal(kx, (2, 3, 7, 7), dtype=jnp.float32)
    w2 = (1.0 + 0.1 * jax.random.normal(kw, (3, 1, 1))).astype(jnp.float32)
    b2 = (0.1 * jax.random.normal(kb, (3, 1, 1))).astype(jnp.float32)
    ref2 = _reference(x2, w2, b2)
    out2 = jax.block_until_ready(layer_norm_drit(x2, w2, b2))
    assert jnp.allclose(out2, ref2, atol=1e-5, rtol=1e-5), "padded layout mismatch"

    print("KERNEL_OK")
</pallas_src>

<mosaic_0001>
module attributes {stable_mosaic.version = 11 : i64} {
  func.func @_ln_resident_kernel(%arg0: i32, %arg1: memref<1x8x128xf32, #tpu.memory_space<vmem>>, %arg2: memref<8x1xf32, #tpu.memory_space<vmem>>, %arg3: memref<8x1xf32, #tpu.memory_space<vmem>>, %arg4: memref<1x8x128xf32, #tpu.memory_space<vmem>>) attributes {dimension_semantics = [#tpu.dimension_semantics<parallel>], iteration_bounds = array<i64: 2>, scalar_prefetch = 0 : i64, scratch_operands = 0 : i64, tpu.core_type = #tpu.core_type<tc>, window_params = [{transform_indices = @transform_0, window_bounds = array<i64: 1, 8, 128>}, {pipeline_mode = #tpu.pipeline_mode<synchronous>, transform_indices = @transform_1, window_bounds = array<i64: 8, 1>}, {pipeline_mode = #tpu.pipeline_mode<synchronous>, transform_indices = @transform_2, window_bounds = array<i64: 8, 1>}, {transform_indices = @transform_3, window_bounds = array<i64: 1, 8, 128>}]} {
    %c0 = arith.constant 0 : index
    %c0_0 = arith.constant 0 : index
    %c0_1 = arith.constant 0 : index
    %0 = vector.load %arg1[%c0, %c0_0, %c0_1] : memref<1x8x128xf32, #tpu.memory_space<vmem>>, vector<1x8x128xf32>
    %1 = vector.shape_cast %0 : vector<1x8x128xf32> to vector<8x128xf32>
    %2 = vector.shape_cast %1 : vector<8x128xf32> to vector<1x8x128xf32>
    %cst = arith.constant dense<0.000000e+00> : vector<1xf32>
    %3 = vector.multi_reduction <add>, %2, %cst [1, 2] : vector<1x8x128xf32> to vector<1xf32>
    %4 = vector.shape_cast %3 : vector<1xf32> to vector<1x1x1xf32>
    %5 = vector.extract %4[0, 0, 0] : f32 from vector<1x1x1xf32>
    %cst_2 = arith.constant 9.765625E-4 : f32
    %6 = arith.mulf %5, %cst_2 : f32
    %7 = vector.broadcast %6 : f32 to vector<8x128xf32>
    %8 = arith.subf %1, %7 : vector<8x128xf32>
    %9 = arith.mulf %8, %8 : vector<8x128xf32>
    %10 = vector.shape_cast %9 : vector<8x128xf32> to vector<1x8x128xf32>
    %cst_3 = arith.constant dense<0.000000e+00> : vector<1xf32>
    %11 = vector.multi_reduction <add>, %10, %cst_3 [1, 2] : vector<1x8x128xf32> to vector<1xf32>
    %12 = vector.shape_cast %11 : vector<1xf32> to vector<1x1x1xf32>
    %13 = vector.extract %12[0, 0, 0] : f32 from vector<1x1x1xf32>
    %14 = arith.mulf %6, %6 : f32
    %cst_4 = arith.constant 0.000000e+00 : f32
    %15 = arith.mulf %cst_4, %14 : f32
    %16 = arith.subf %13, %15 : f32
    %cst_5 = arith.constant 9.765625E-4 : f32
    %17 = arith.mulf %16, %cst_5 : f32
    %cst_6 = arith.constant 0.000000e+00 : f32
    %18 = arith.maximumf %17, %cst_6 : f32
    %cst_7 = arith.constant 9.99999974E-6 : f32
    %19 = arith.addf %18, %cst_7 : f32
    %20 = math.rsqrt %19 : f32
    %c0_8 = arith.constant 0 : index
    %c0_9 = arith.constant 0 : index
    %21 = vector.load %arg2[%c0_8, %c0_9] : memref<8x1xf32, #tpu.memory_space<vmem>>, vector<8x1xf32>
    %c0_10 = arith.constant 0 : index
    %c0_11 = arith.constant 0 : index
    %22 = vector.load %arg3[%c0_10, %c0_11] : memref<8x1xf32, #tpu.memory_space<vmem>>, vector<8x1xf32>
    %23 = vector.broadcast %20 : f32 to vector<8x1xf32>
    %24 = arith.mulf %23, %21 : vector<8x1xf32>
    %25 = vector.broadcast %24 : vector<8x1xf32> to vector<8x128xf32>
    %26 = arith.mulf %8, %25 : vector<8x128xf32>
    %27 = vector.broadcast %22 : vector<8x1xf32> to vector<8x128xf32>
    %28 = arith.addf %26, %27 : vector<8x128xf32>
    %c0_12 = arith.constant 0 : index
    %c0_13 = arith.constant 0 : index
    %c0_14 = arith.constant 0 : index
    %29 = vector.load %arg4[%c0_12, %c0_13, %c0_14] : memref<1x8x128xf32, #tpu.memory_space<vmem>>, vector<1x8x128xf32>
    %30 = vector.shape_cast %29 : vector<1x8x128xf32> to vector<8x128xf32>
    %31 = vector.shape_cast %28 : vector<8x128xf32> to vector<1x8x128xf32>
    tpu.vector_store %arg4[%c0_12, %c0_13, %c0_14], %31 {strides = array<i32>} : memref<1x8x128xf32, #tpu.memory_space<vmem>>, vector<1x8x128xf32>,
    return
  }
  func.func @transform_0(%arg0: i32) -> (i32, i32, i32) {
    %c0_i32 = arith.constant 0 : i32
    %c0_i32_0 = arith.constant 0 : i32
    %c0_i32_1 = arith.constant 0 : i32
    return %arg0, %c0_i32, %c0_i32_0 : i32, i32, i32
  }
  func.func @transform_1(%arg0: i32) -> (i32, i32) {
    %c0_i32 = arith.constant 0 : i32
    %c0_i32_0 = arith.constant 0 : i32
    %c0_i32_1 = arith.constant 0 : i32
    return %c0_i32, %c0_i32_0 : i32, i32
  }
  func.func @transform_2(%arg0: i32) -> (i32, i32) {
    %c0_i32 = arith.constant 0 : i32
    %c0_i32_0 = arith.constant 0 : i32
    %c0_i32_1 = arith.constant 0 : i32
    return %c0_i32, %c0_i32_0 : i32, i32
  }
  func.func @transform_3(%arg0: i32) -> (i32, i32, i32) {
    %c0_i32 = arith.constant 0 : i32
    %c0_i32_0 = arith.constant 0 : i32
    %c0_i32_1 = arith.constant 0 : i32
    return %arg0, %c0_i32, %c0_i32_0 : i32, i32, i32
  }
}

</mosaic_0001>

<bundles_post_ra>
// kernel: tpu_custom_call.1
= control target key start
LH: loop header
LB: loop body
LE: loop exit
PB: predicated region body
PF: predicated region fallthrough
CT: control target
= control target key end

     0   :  { %8 = vsyncpa [#allocation3], 0  ;;  %s542_s0 = inlined_call_operand.vmem [shape: f32[2,8,128], index: 0, kind: input, shape index: {}]   ;;  %s543_s1 = inlined_call_operand.vmem [shape: f32[8,1], index: 1, kind: input, shape index: {}]   ;;  %s544_s2 = inlined_call_operand.vmem [shape: f32[8,1], index: 2, kind: input, shape index: {}]   ;;  %s545_s3 = inlined_call_operand.hbm [shape: f32[2,8,128], index: 3, kind: output, shape index: {}]  }
   0x1   :  { %10 = vsyncpa [#allocation3 + $0x1], 0  ;;  %s436_s12 = smov 0   ;;  %s438_s13 = smov 0  }
   0x2   :  { %s440_s14 = smov 0   ;;  %s442_s15 = smov 0  }
   0x3 LB: > { %s457_s16 = sadd.s32 4294967295, %s411_s15   ;;  %s288_s17 = sadd.s32 4294967294, %s411_s15   ;;  %s411_s15 = sphi %s442_s15, %s551_s15   ;;  %s407_s14 = sphi %s440_s14, %s550_s14   ;;  %s403_s13 = sphi %s438_s13, %s549_s13   ;;  %s399_s12 = sphi %s436_s12, %s548_s12  }
   0x4   : > { %s461_s18 = sadd.s32 1, %s411_s15   ;;  %s91_s19 = sadd.s32 1, %s407_s14 }
   0x5   : > { %s88_s20 = ssub.s32 %s411_s15, %s461_s18  ;;  %p101_p0 = scmp.ne.s32.totalorder %s407_s14, %s403_s13 }
   0x6   : > { %p89_p1 = scmp.eq.s32.totalorder %s88_s20, 0  ;;  %p102_p2 = scmp.eq.s32.totalorder %s457_s16, 1 }
   0x7   : > { %p107_p3 = scmp.ne.s32.totalorder %s403_s13, %s399_s12  ;;  %p108_p4 = scmp.eq.s32.totalorder %s288_s17, 1 }
   0x8   : > { %s472_s21 = scalar_select %p89_p1, %s407_s14, %s91_s19  }
   0x9   : > { %p474_p5 = por %p102_p2, %p101_p0  ;;  %p478_p6 = por %p108_p4, %p107_p3 }
   0xa   : > { %p291_p7 = scmp.ge.s32.totalorder %s411_s15, 1  ;;  %p139_p8 = scmp.lt.s32.totalorder %s411_s15, 3 }
   0xc   : > { %p140_p9 = pnand %p291_p7, %p139_p8 }
   0xd   : > { %p162_p10 = scmp.lt.s32.totalorder (!%p140_p9), %s457_s16, 1  ;;  %v413_v15 = vmov (!%p140_p9), 0   ;;  %s414_s9 = smov (!%p140_p9), 0.0   ;;  %v198_v21 = vld [vmem:[%s543_s1] sm:$0xff] (!%p140_p9) }
   0xe   : > { %143 = sbr.rel (%p140_p9) target bundleno = 661 (0x295), region = 32  ;;  %345 = vset.pattern.permute.xlu1 (!%p140_p9), %v413_v15  ;;  %346 = vset.pattern.permute.xlu0 (!%p140_p9), %v413_v15  ;;  %v199_v24 = vld [vmem:[%s544_s2] sm:$0xff] (!%p140_p9)  ;;  %s159_s26 = sand.u32 (!%p140_p9), 1, %s403_s13  }
   0xf   : > { %s292_s27 = sshll.u32 (!%p140_p9), %s159_s26, 3 }
  0x15   : > { %s163_s24 = scalar_select %p162_p10, %s457_s16, 1 }
  0x17   : > { %s293_s25 = sshll.u32 %s163_s24, 3 }
  0x18   : > { %s165_s28 = scalar_lea.vmem %s542_s0, %s293_s25 }
  0x19   : > { %v166_v0 = vld [vmem:[%s165_s28] sm:$0xff]  ;;  %s295_s28 = sshll.u32 %s457_s16, 7  ;;  %s415_s16 = smov [#allocation2]  }
  0x1a   : > { %167 = vadd.xlane.f32.xlu0 %v166_v0 }
  0xa7   : > { %v168_v1 = vpop.xlane.xlu0 %167 }
  0xa8   : > { %v169_v2 = vrot.slane %v168_v1, 4 }
  0xaa   : > { %v170_v3 = vadd.f32 %v169_v2, %v168_v1 }
  0xac   : > { %v171_v4 = vrot.slane %v170_v3, 2 }
  0xae   : > { %v172_v5 = vadd.f32 %v171_v4, %v170_v3 }
  0xb0   : > { %v173_v6 = vrot.slane %v172_v5, 1 }
  0xb2   : > { %v174_v7 = vadd.f32 %v173_v6, %v172_v5 }
  0xb4   : > { %298 = vpush %v174_v7 }
  0xe5   : > { %s299_s29 = spop %298 }
  0xe6   : > { %s176_s30 = smul.f32 0.0009765625, %s299_s29  ;;  %s161_s29 = scalar_lea.vmem [#allocation2], %s292_s27 }
  0xe8   : > { %v177_v8 = vstv %s176_s30  ;;  %s189_s4 = smul.f32 %s176_s30, %s176_s30  ;;  %s229_s30 = sshll.u32 %s161_s29, 4  ;;  %s502_s30 = int_to_ptr.vmem [resolvable:$true] %s229_s30 }
  0xe9   : > { %v178_v9 = vsub.f32 %v166_v0, %v177_v8 }
  0xea   : > { %s190_s5 = smul.f32 0.0, %s189_s4 }
  0xeb   : > { %v179_v10 = vmul.f32 %v178_v9, %v178_v9 }
  0xed   : > { %180 = vadd.xlane.f32.xlu0 %v179_v10 }
 0x17a   : > { %v181_v11 = vpop.xlane.xlu0 %180 }
 0x17b   : > { %v182_v12 = vrot.slane %v181_v11, 4 }
 0x17d   : > { %v183_v13 = vadd.f32 %v182_v12, %v181_v11 }
 0x17f   : > { %v184_v14 = vrot.slane %v183_v13, 2 }
 0x181   : > { %v185_v16 = vadd.f32 %v184_v14, %v183_v13 }
 0x183   : > { %v186_v17 = vrot.slane %v185_v16, 1 }
 0x185   : > { %v187_v18 = vadd.f32 %v186_v17, %v185_v16 }
 0x187   : > { %300 = vpush %v187_v18 }
 0x1b8   : > { %s301_s6 = spop %300 }
 0x1b9   : > { %s191_s7 = ssub.f32 %s301_s6, %s190_s5  ;;  %s500_s6 = scalar_lea.hbm %s545_s3, %s295_s28 }
 0x1bb   : > { %s192_s8 = smul.f32 0.0009765625, %s191_s7  ;;  %s216_s7 = scalar_lea.sflag [#allocation3], %s159_s26 }
 0x1bd   : > { %s193_s10 = smax.f32 %s414_s9, %s192_s8  ;;  %s349_s8 = scalar_lea.vmem %s502_s30, 128 }
 0x1be   : > { %s194_s11 = sadd.f32 1e-05, %s193_s10  ;;  %p350_p11 = scmp.ne.s32.totalorder %s502_s30, %s349_s8 }
 0x1bf   : > { %s353_s9 = sshll.u32 %s415_s16, 4  ;;  %s354_s9 = int_to_ptr.vmem [resolvable:$false] %s353_s9 }
 0x1c0   : > { %v195_v19 = vstv %s194_s11  ;;  %p351_p12 = pnand %p350_p11, %p474_p5  ;;  %s355_s10 = scalar_lea.vmem %s354_s9, 256 }
 0x1c1   : > { %347 = vrsqrt.f32 %v195_v19  ;;  %p356_p0 = scmp.lt.s32.totalorder %s502_s30, %s354_s9  ;;  %p357_p1 = scmp.lt.s32.totalorder %s355_s10, %s349_s8 }
 0x1c2   : > { %p352_p13 = pneg %p351_p12 }
 0x1c3   : > { %p358_p2 = por %p357_p1, %p356_p0 }
 0x1c5   : > { %p359_p3 = pnand %p358_p2, %p352_p13 }
 0x1cb   : > { %v348_v20 = vpop.eup %347 }
 0x1cc   : > { %302 = vpush %v348_v20 }
 0x1fd   : > { %s303_s20 = spop %302 }
 0x1fe   : > { %v200_v22 = vstv %s303_s20 }
 0x1ff   : > { %v201_v23 = vmul.f32 %v200_v22, %v198_v21 }
 0x201   : > { %204 = vperm.xlu1 %345, %v201_v23  }
 0x205   : > { %210 = vperm.xlu1 %345, %v199_v24  }
 0x280   : > { %v205_v25 = vpop.permute.xlu1 %204 }
 0x281   : > { %v207_v26 = vmul.f32 %v205_v25, %v178_v9 }
 0x284   : > { %v211_v27 = vpop.permute.xlu1 %210 }
 0x285   : > { %v213_v28 = vadd.f32 %v211_v27, %v207_v26 }
 0x287   : > { %214 = vst [vmem:[%s161_s29] sm:$0xff] %v213_v28 }
 0x288   : > { %362 = shalt.err (!%p359_p3)
}
 0x289   : > { %s363_s11 = scalar_lea.hbm %s500_s6, 128  ;;  %s367_s20 = scalar_lea.hbm %s545_s3, 256 }
 0x28a   : > { %p364_p4 = scmp.ne.s32.totalorder %s500_s6, %s363_s11  ;;  %p368_p9 = scmp.lt.u32.totalorder %s500_s6, %s545_s3 }
 0x28b   : > { %p369_p10 = scmp.lt.u32.totalorder %s367_s20, %s363_s11  ;;  %p371_p12 = scmp.lt.u32.totalorder %s363_s11, %s500_s6 }
 0x28c   : > { %p365_p7 = pnand %p364_p4, %p474_p5 }
 0x28d   : > { %p370_p11 = por %p369_p10, %p368_p9 }
 0x28e   : > { %p366_p8 = pneg %p365_p7 }
 0x28f   : > { %p372_p13 = por %p371_p12, %p370_p11 }
 0x291   : > { %p373_p0 = pnand %p372_p13, %p366_p8 }
 0x293   : > { %376 = shalt.err (!%p373_p0)
}
 0x294   : > { %304 = dma.vmem_to_hbm [thread:$0]  (%p474_p5), %s502_s30, 128, %s500_s6, %s216_s7  }
 0x295 PF: > { %p310_p1 = scmp.ge.s32.totalorder %s411_s15, 2  ;;  %s241_s26 = sand.u32 1, %s399_s12  }
 0x296   : > { %s242_s27 = scalar_lea.sflag [#allocation3], %s241_s26 }
 0x297   : > { %p307_p2 = pnand %p310_p1, %p478_p6 }
 0x299   : > { %394 = dma.done.wait (!%p307_p2), %s242_s27, 128  }
 0x29a   : > { %396 = vsyncadd (!%p307_p2), %s242_s27, 4294967168  ;;  %p13_p3 = scmp.ge.s32.totalorder %s461_s18, 4   ;;  %s548_s12 = smov %s403_s13 }
 0x29b   : > { %s549_s13 = smov %s407_s14  ;;  %s550_s14 = smov %s472_s21 }
 0x29c   : > { %s551_s15 = smov %s461_s18  ;;  %15 = sbr.rel (!%p13_p3) target bundleno = 3 (0x3), region = 67 }
 0x2a3   :  { %247 = vsyncpa [#allocation3], 1 }
 0x2a4   :  { %249 = vsyncpa [#allocation3 + $0x1], 1 }

</bundles_post_ra>
